<compile_context>
chip_gen: v6e
topology: v6e:2x2x1
jax: 0.10.0
libtpu: 0.0.40
codegen_flags: <defaults>
</compile_context>

<pallas_src>
import functools
import math

import jax
import jax.numpy as jnp
from jax import lax
from jax.experimental import pallas as pl
from jax.experimental.pallas import tpu as pltpu


# --------------------------- VMEM / tile helpers ---------------------------

def _vmem_params():
    """(tile-selection budget, vmem_limit_bytes) derived from the actual chip
    (v5e/v6e: 128 MiB per core, v7x: 64 MiB per TensorCore)."""
    cap = 64 * 1024 * 1024          # conservative default (v7x per-TC VMEM)
    try:
        cap = int(pltpu.get_tpu_info().vmem_capacity_bytes)
    except Exception:
        pass
    limit = min(int(cap * 0.9), cap - 4 * 1024 * 1024, 112 * 1024 * 1024)
    budget = int(cap * 0.55)
    return budget, limit


def _divisor_tiles(dim, targets=(1024, 512, 256, 128, 64, 32, 16, 8)):
    return [t for t in targets if t <= dim and dim % t == 0]


def _pick_row_tile(dim, per_row_bytes, budget_bytes):
    """Largest row tile (multiple of 8 dividing `dim`, else full dim) whose
    per-step footprint fits `budget_bytes`."""
    cands = _divisor_tiles(dim)
    if not cands:
        return dim
    for t in cands:
        if t * per_row_bytes <= budget_bytes:
            return t
    return cands[-1]


def _first_divisor(dim, targets):
    for t in targets:
        if t <= dim and dim % t == 0:
            return t
    return dim


# ----------------------- generic linear (fallback path) --------------------

def _linear_wres_kernel(x_ref, w_ref, o_ref):
    o_ref[...] = jnp.dot(x_ref[...], w_ref[...],
                         preferred_element_type=jnp.float32).astype(o_ref.dtype)


def _linear_tiled_kernel(x_ref, w_ref, o_ref, acc_ref):
    @pl.when(pl.program_id(2) == 0)
    def _():
        acc_ref[...] = jnp.zeros_like(acc_ref)

    acc_ref[...] += jnp.dot(x_ref[...], w_ref[...],
                            preferred_element_type=jnp.float32)

    @pl.when(pl.program_id(2) == pl.num_programs(2) - 1)
    def _():
        o_ref[...] = acc_ref[...].astype(o_ref.dtype)


def pallas_linear(x2d, w_t, out_dtype, budget, limit):
    """y = x2d @ w_t.  Single pass with the whole weight resident when it
    fits VMEM (grid over rows only, no reduction axis, no accumulator);
    otherwise a 3-axis tiled matmul with an f32 accumulator."""
    n, k = x2d.shape
    k2, o = w_t.shape
    assert k == k2
    wbytes = 2 * k * o * w_t.dtype.itemsize          # count double buffering
    if wbytes <= budget * 2 // 3:
        per_row = (2 * k * x2d.dtype.itemsize
                   + 2 * o * jnp.dtype(out_dtype).itemsize)
        tm = _pick_row_tile(n, per_row, budget - wbytes)
        return pl.pallas_call(
            _linear_wres_kernel,
            out_shape=jax.ShapeDtypeStruct((n, o), out_dtype),
            grid=(n // tm,),
            in_specs=[pl.BlockSpec((tm, k), lambda i: (i, 0)),
                      pl.BlockSpec((k, o), lambda i: (0, 0))],
            out_specs=pl.BlockSpec((tm, o), lambda i: (i, 0)),
            compiler_params=pltpu.CompilerParams(
                dimension_semantics=("parallel",), vmem_limit_bytes=limit),
        )(x2d, w_t)
    tm = _first_divisor(n, (512, 256, 128, 64, 32, 16, 8))
    tn = _first_divisor(o, (512, 256, 128))
    tk = _first_divisor(k, (512, 256, 128))
    return pl.pallas_call(
        _linear_tiled_kernel,
        out_shape=jax.ShapeDtypeStruct((n, o), out_dtype),
        grid=(n // tm, o // tn, k // tk),
        in_specs=[pl.BlockSpec((tm, tk), lambda i, j, kk: (i, kk)),
                  pl.BlockSpec((tk, tn), lambda i, j, kk: (kk, j))],
        out_specs=pl.BlockSpec((tm, tn), lambda i, j, kk: (i, j)),
        scratch_shapes=[pltpu.VMEM((tm, tn), jnp.float32)],
        compiler_params=pltpu.CompilerParams(
            dimension_semantics=("parallel", "parallel", "arbitrary"),
            vmem_limit_bytes=limit),
    )(x2d, w_t)


# ----------------- fused QKV projection -> [B, M, S, H*Dh] -----------------

def _qkv_heads_kernel(x_ref, wq_ref, wk_ref, wv_ref, q_ref, k_ref, v_ref, *,
                      n_multihead, hdh):
    x = x_ref[0]                                       # [tS, E] bf16
    for w_ref, o_ref in ((wq_ref, q_ref), (wk_ref, k_ref), (wv_ref, v_ref)):
        y = jnp.dot(x, w_ref[...], preferred_element_type=jnp.float32)
        for m in range(n_multihead):                   # static column split
            o_ref[0, m] = y[:, m * hdh:(m + 1) * hdh].astype(o_ref.dtype)


def pallas_qkv_heads(x, w_q_t, w_k_t, w_v_t, n_multihead, hdh, budget, limit):
    """x:[B,S,E] -> q,k,v each [B, M, S, H*Dh].  x is read from HBM once,
    all three weights stay resident (their block index never changes)."""
    B, S, E = x.shape
    cdt = w_q_t.dtype
    x = x.astype(cdt)
    wbytes = 2 * 3 * E * E * cdt.itemsize              # double-buffer counted
    if wbytes <= budget * 2 // 3:
        tS = _pick_row_tile(S, 8 * E * cdt.itemsize, budget - wbytes)
        out_sd = jax.ShapeDtypeStruct((B, n_multihead, S, hdh), cdt)
        kernel = functools.partial(_qkv_heads_kernel,
                                   n_multihead=n_multihead, hdh=hdh)
        wspec = pl.BlockSpec((E, E), lambda b, i: (0, 0))
        ospec = pl.BlockSpec((1, n_multihead, tS, hdh),
                             lambda b, i: (b, 0, i, 0))
        return pl.pallas_call(
            kernel,
            out_shape=(out_sd, out_sd, out_sd),
            grid=(B, S // tS),
            in_specs=[pl.BlockSpec((1, tS, E), lambda b, i: (b, i, 0)),
                      wspec, wspec, wspec],
            out_specs=(ospec, ospec, ospec),
            compiler_params=pltpu.CompilerParams(
                dimension_semantics=("parallel", "parallel"),
                vmem_limit_bytes=limit),
        )(x, w_q_t, w_k_t, w_v_t)
    # Fallback for very large E: three tiled matmuls + XLA head rearrange.
    x2d = x.reshape(B * S, E)
    outs = []
    for w in (w_q_t, w_k_t, w_v_t):
        y = pallas_linear(x2d, w, cdt, budget, limit)
        outs.append(y.reshape(B, S, n_multihead, hdh).transpose(0, 2, 1, 3))
    return tuple(outs)


# ----------------------------- attention kernel ----------------------------

def _mi_attn_kernel(pidx_ref, hmsk_ref, q_ref, k_ref, v_ref, *rest,
                    n_head, head_size, overlay_causal, q_tile, mask_present,
                    exp_dtype):
    if mask_present:
        m_ref, o_ref, l_ref = rest
    else:
        o_ref, l_ref = rest
    H, Dh = n_head, head_size
    TQ = q_ref.shape[2]
    S = k_ref.shape[2]

    q = q_ref[0, 0]                                    # [TQ, H*Dh] bf16
    k = k_ref[0, 0]                                    # [S,  H*Dh] bf16
    v = v_ref[0, 0]                                    # [S,  H*Dh] bf16

    keep = None
    if overlay_causal:
        # Causal mask generated in-kernel (no causal stream from HBM).
        q0 = pl.program_id(2) * q_tile
        rows = lax.broadcasted_iota(jnp.int32, (TQ, S), 0) + q0
        cols = lax.broadcasted_iota(jnp.int32, (TQ, S), 1)
        keep = rows >= cols
    if mask_present:
        # hmsk_ref[m]==0 means this tag has no real mask: ignore the plane
        # (it points at a shared, unrelated plane so nothing was shipped for
        # the all-ones case).
        m_idx = pl.program_id(1)
        tag_keep = jnp.logical_or(m_ref[0, 0] != 0, hmsk_ref[m_idx] == 0)
        keep = tag_keep if keep is None else jnp.logical_and(keep, tag_keep)

    for h in range(H):                                 # static unroll
        c0 = h * Dh
        # NT contraction on the MXU (no in-kernel transpose of k).
        s = lax.dot_general(q[:, c0:c0 + Dh], k[:, c0:c0 + Dh],
                            (((1,), (1,)), ((), ())),
                            preferred_element_type=jnp.float32)   # [TQ, S]
        if keep is not None:
            s = jnp.where(keep, s, -jnp.inf)
        # Pre-softmax logits (att_logits in the torch module); bf16 by default
        # to halve the dominant HBM store stream.
        l_ref[0, 0, h] = s.astype(l_ref.dtype)
        # Softmax: denominator applied AFTER the PV matmul with an EUP
        # approximate reciprocal (touches TQ*Dh elements, not TQ*S).
        # NOTE: a fully-masked row yields NaN, same as the PyTorch module.
        rmax = jnp.max(s, axis=-1, keepdims=True)
        xs = s - rmax
        if jnp.dtype(exp_dtype) != jnp.dtype(jnp.float32):
            xs = xs.astype(exp_dtype)                  # bf16 EUP on v6e/v7x
        e = jnp.exp(xs)
        denom = jnp.sum(e, axis=-1, keepdims=True, dtype=jnp.float32)
        pv = jnp.dot(e.astype(v.dtype), v[:, c0:c0 + Dh],
                     preferred_element_type=jnp.float32)          # [TQ, Dh]
        # Per-head store straight into the context block (no concatenate).
        o_ref[0, 0, :, c0:c0 + Dh] = (
            pv * pl.reciprocal(denom, approx=True)).astype(o_ref.dtype)


def pallas_mi_attention(q, k, v, mask_arr, plane_idx, has_mask, n_head,
                        head_size, overlay_causal, logits_dtype, exp_dtype,
                        budget, limit):
    """q/k/v: [B, M, S, H*Dh].  mask_arr: [B, P, S, S] int8 (planes only for
    tags that actually have a mask) or None.  Returns context in the same
    layout and pre-softmax logits [B, M, H, S, S]."""
    B, M, S, HDh = q.shape
    H, Dh = n_head, head_size
    E = M * HDh
    lsize = jnp.dtype(logits_dtype).itemsize
    csize = q.dtype.itemsize
    mask_present = mask_arr is not None

    # VMEM accounting (all pipelined blocks counted double-buffered).
    resident = 2 * (2 * S * HDh * csize)               # per-tag K + V blocks
    per_row = (2 * (2 * HDh * csize)                   # q + ctx blocks
               + 2 * H * S * lsize                     # logits block
               + (2 * S if mask_present else 0)        # int8 mask block
               + 2 * S * 4)                            # f32 score/exp temps
    TQ = _pick_row_tile(S, per_row, budget - resident)
    # TODO(synk): for very long S, stream K/V tiles with online softmax
    # instead of keeping the per-tag K/V slab resident.

    kernel = functools.partial(
        _mi_attn_kernel, n_head=H, head_size=Dh,
        overlay_causal=overlay_causal, q_tile=TQ, mask_present=mask_present,
        exp_dtype=exp_dtype)

    in_specs = [
        pl.BlockSpec((1, 1, TQ, HDh),
                     lambda b, m, qi, pidx, hmsk: (b, m, qi, 0)),
        pl.BlockSpec((1, 1, S, HDh),
                     lambda b, m, qi, pidx, hmsk: (b, m, 0, 0)),
        pl.BlockSpec((1, 1, S, HDh),
                     lambda b, m, qi, pidx, hmsk: (b, m, 0, 0)),
    ]
    args = [q, k, v]
    if mask_present:
        in_specs.append(
            pl.BlockSpec((1, 1, TQ, S),
                         lambda b, m, qi, pidx, hmsk: (b, pidx[m], qi, 0)))
        args.append(mask_arr)

    out_specs = (
        pl.BlockSpec((1, 1, TQ, HDh),
                     lambda b, m, qi, pidx, hmsk: (b, m, qi, 0)),
        pl.BlockSpec((1, 1, H, TQ, S),
                     lambda b, m, qi, pidx, hmsk: (b, m, 0, qi, 0)),
    )

    cost = pl.CostEstimate(
        flops=int(4 * B * M * H * S * S * Dh),
        transcendentals=int(B * M * H * S * S),
        bytes_accessed=int(B * M * H * S * S * lsize     # logits store
                           + 4 * B * S * E * csize       # q/k/v read + ctx
                           + (B * M * S * S if mask_present else 0)))

    return pl.pallas_call(
        kernel,
        out_shape=(jax.ShapeDtypeStruct((B, M, S, HDh), q.dtype),
                   jax.ShapeDtypeStruct((B, M, H, S, S), logits_dtype)),
        grid_spec=pltpu.PrefetchScalarGridSpec(
            num_scalar_prefetch=2,
            grid=(B, M, S // TQ),
            in_specs=in_specs,
            out_specs=out_specs),
        compiler_params=pltpu.CompilerParams(
            dimension_semantics=("parallel", "parallel", "parallel"),
            vmem_limit_bytes=limit),
        cost_estimate=cost,
    )(plane_idx, has_mask, *args)


# --------------- output projection directly from head layout ---------------

def _proj_kernel(ctx_ref, w_ref, o_ref, acc_ref):
    m = pl.program_id(2)

    @pl.when(m == 0)
    def _():
        acc_ref[...] = jnp.zeros_like(acc_ref)

    acc_ref[...] += jnp.dot(ctx_ref[0, 0], w_ref[m],
                            preferred_element_type=jnp.float32)

    @pl.when(m == pl.num_programs(2) - 1)
    def _():
        o_ref[0] = acc_ref[...].astype(o_ref.dtype)


def pallas_proj_from_heads(ctx, w_proj_t, budget, limit,
                           out_dtype=jnp.float32):
    """out[b,s,:] = sum_m ctx[b,m,s,:] @ w_proj_t[m*HDh:(m+1)*HDh, :]  — the
    head->embedding transpose is folded into the matmul reduction axis."""
    B, M, S, HDh = ctx.shape
    E = M * HDh
    wbytes = 2 * E * E * w_proj_t.dtype.itemsize
    if wbytes > budget * 2 // 3:
        # Very large E: XLA transpose + tiled matmul fallback.
        x2d = ctx.transpose(0, 2, 1, 3).reshape(B * S, E)
        return pallas_linear(x2d, w_proj_t, out_dtype, budget,
                             limit).reshape(B, S, E)
    osize = jnp.dtype(out_dtype).itemsize
    per_row = 2 * HDh * ctx.dtype.itemsize + 2 * E * osize + E * 4
    tS = _pick_row_tile(S, per_row, budget - wbytes)
    w3 = w_proj_t.reshape(M, HDh, E)
    return pl.pallas_call(
        _proj_kernel,
        out_shape=jax.ShapeDtypeStruct((B, S, E), out_dtype),
        grid=(B, S // tS, M),
        in_specs=[pl.BlockSpec((1, 1, tS, HDh),
                               lambda b, i, m: (b, m, i, 0)),
                  pl.BlockSpec((M, HDh, E), lambda b, i, m: (0, 0, 0))],
        out_specs=pl.BlockSpec((1, tS, E), lambda b, i, m: (b, i, 0)),
        scratch_shapes=[pltpu.VMEM((tS, E), jnp.float32)],
        compiler_params=pltpu.CompilerParams(
            dimension_semantics=("parallel", "parallel", "arbitrary"),
            vmem_limit_bytes=limit),
    )(ctx, w3)


# ------------------------------ Module wrapper ------------------------------

class MIAttentionPallas:
    """JAX/Pallas equivalent of MIAttention (eval mode, no dropout,
    use_dual_fixed=False, bias=False)."""

    def __init__(self, n_embd, layer_description, block_size,
                 attn_dropout=0.0, resid_dropout=0.0, overlay_causal=True,
                 compute_dtype=jnp.bfloat16, logits_dtype=jnp.bfloat16,
                 exp_dtype=jnp.float32, key=None):
        if key is None:
            key = jax.random.PRNGKey(0)
        self.tags = tuple(layer_description[0])
        self.n_multihead = len(self.tags)
        self.n_head = layer_description[1]
        assert n_embd % (self.n_multihead * self.n_head) == 0
        self.head_size = n_embd // (self.n_multihead * self.n_head)
        self.hdh = self.n_head * self.head_size
        self.n_embd = n_embd
        self.block_size = block_size
        self.overlay_causal = overlay_causal
        self.compute_dtype = jnp.dtype(compute_dtype)
        # bf16 logits (default) halve the dominant HBM store stream; pass
        # logits_dtype=jnp.float32 to recover exact torch-f32 logits.
        self.logits_dtype = jnp.dtype(logits_dtype)
        # exp_dtype=jnp.bfloat16 is profitable on v6e/v7x (packed bf16 EUP);
        # keep the f32 default on v5e.
        self.exp_dtype = jnp.dtype(exp_dtype)
        self._budget, self._limit = _vmem_params()
        # TODO(synk): attn/resid dropout and the use_dual_fixed=True path are
        # not implemented (module exercised in eval mode with defaults).

        k1, k2 = jax.random.split(key)
        bound = 1.0 / math.sqrt(n_embd)
        # PyTorch nn.Linear weight layout is [out, in]; pre-transpose and
        # pre-cast once.  The torch module applies head_size**-0.5 to the
        # scores TWICE (== 1/head_size); fold it into w_q in f32 here.
        w_qkv = jax.random.uniform(k1, (3 * n_embd, n_embd),
                                   jnp.float32, -bound, bound)
        w_proj = jax.random.uniform(k2, (n_embd, n_embd),
                                    jnp.float32, -bound, bound)
        cdt = self.compute_dtype
        scale = 1.0 / float(self.head_size)
        self.w_q_t = jnp.asarray(w_qkv[:n_embd].T * scale, cdt)
        self.w_k_t = jnp.asarray(w_qkv[n_embd:2 * n_embd].T, cdt)
        self.w_v_t = jnp.asarray(w_qkv[2 * n_embd:].T, cdt)
        self.w_proj_t = jnp.asarray(w_proj.T, cdt)

    def _build_tag_masks(self, masks, B, S):
        """Only tags with a real mask get an int8 plane; all-ones masks are
        never materialized or shipped."""
        planes, plane_idx, has_mask = [], [], []
        for tag in self.tags:
            m = None if masks is None else masks.get(tag, None)
            if m is None:
                plane_idx.append(0)
                has_mask.append(0)
            else:
                plane_idx.append(len(planes))
                has_mask.append(1)
                planes.append(jnp.broadcast_to(jnp.asarray(m, bool),
                                               (B, S, S)).astype(jnp.int8))
        mask_arr = jnp.stack(planes, axis=1) if planes else None
        return (mask_arr,
                jnp.asarray(plane_idx, jnp.int32),
                jnp.asarray(has_mask, jnp.int32))

    def __call__(self, x, masks):
        B, S, E = x.shape
        assert E == self.n_embd
        budget, limit = self._budget, self._limit

        # Fused QKV projection straight into [B, M, S, H*Dh] head layout.
        q, k, v = pallas_qkv_heads(x, self.w_q_t, self.w_k_t, self.w_v_t,
                                   self.n_multihead, self.hdh, budget, limit)

        mask_arr, plane_idx, has_mask = self._build_tag_masks(masks, B, S)

        ctx, logits = pallas_mi_attention(
            q, k, v, mask_arr, plane_idx, has_mask, self.n_head,
            self.head_size, self.overlay_causal, self.logits_dtype,
            self.exp_dtype, budget, limit)

        out = pallas_proj_from_heads(ctx, self.w_proj_t, budget, limit,
                                     out_dtype=jnp.float32)

        out_logits = {tag: [logits[:, m, h] for h in range(self.n_head)]
                      for m, tag in enumerate(self.tags)}
        return out, out_logits


# --------------------------------- Reference --------------------------------

def reference_forward(mod, x, masks):
    """Pure-JAX reference mirroring the kernel numerics (bf16 operands, f32
    accumulation, same cast points; exact reciprocal instead of approx)."""
    B, S, E = x.shape
    M, H, Dh = mod.n_multihead, mod.n_head, mod.head_size
    MH = M * H
    cdt = mod.compute_dtype
    x2d = x.reshape(B * S, E).astype(cdt)

    def lin(a, w):
        return jnp.dot(a, w, preferred_element_type=jnp.float32)

    q = lin(x2d, mod.w_q_t).astype(cdt).reshape(B, S, MH, Dh)
    k = lin(x2d, mod.w_k_t).astype(cdt).reshape(B, S, MH, Dh)
    v = lin(x2d, mod.w_v_t).astype(cdt).reshape(B, S, MH, Dh)

    s = jnp.einsum("bqnd,bknd->bnqk", q, k,
                   preferred_element_type=jnp.float32).reshape(B, M, H, S, S)

    keep = jnp.ones((B, M, 1, S, S), bool)
    for m, tag in enumerate(mod.tags):
        mm = None if masks is None else masks.get(tag, None)
        if mm is not None:
            mm = jnp.broadcast_to(jnp.asarray(mm, bool), (B, S, S))
            keep = keep.at[:, m, 0].set(mm)
    if mod.overlay_causal:
        keep = jnp.logical_and(keep, jnp.tril(jnp.ones((S, S), bool)))
    s = jnp.where(keep, s, -jnp.inf)
    att_logits = s

    e = jnp.exp(s - jnp.max(s, axis=-1, keepdims=True))
    p = e / jnp.sum(e, axis=-1, keepdims=True)
    pv = jnp.einsum("bnqk,bknd->bqnd",
                    p.astype(cdt).reshape(B, MH, S, S), v,
                    preferred_element_type=jnp.float32)
    out_heads = pv.astype(cdt).reshape(B * S, E)
    out = lin(out_heads, mod.w_proj_t).reshape(B, S, E)
    out_logits = {tag: [att_logits[:, m, h] for h in range(H)]
                  for m, tag in enumerate(mod.tags)}
    return out, out_logits


# ---------------------------------- Driver ----------------------------------

if __name__ == "__main__":
    key = jax.random.PRNGKey(0)
    k_x, k_m, k_w = jax.random.split(key, 3)

    B, S, E = 2, 8, 32
    tags = ("head", "child")
    n_head = 2
    block_size = 16

    mod = MIAttentionPallas(E, (tags, n_head), block_size,
                            overlay_causal=True, key=k_w)

    x = jax.random.normal(k_x, (B, S, E), jnp.float32)
    # one tag gets a real mask (diagonal forced True so no row ends up fully
    # masked after the causal overlay), the other uses the implicit ones mask
    rand_mask = jax.random.uniform(k_m, (B, S, S)) > 0.4
    rand_mask = jnp.logical_or(rand_mask, jnp.eye(S, dtype=bool)[None])
    masks = {"head": rand_mask, "child": None}

    out, out_logits = mod(x, masks)
    out = jax.block_until_ready(out)
    for tag in tags:
        out_logits[tag] = [jax.block_until_ready(t) for t in out_logits[tag]]

    # verify against a pure-JAX reference mirroring the kernel numerics
    ref_out, ref_logits = reference_forward(mod, x, masks)
    assert jnp.allclose(out, ref_out, atol=3e-2, rtol=3e-2), "output mismatch"
    for tag in tags:
        for h in range(n_head):
            assert jnp.allclose(out_logits[tag][h].astype(jnp.float32),
                                ref_logits[tag][h],
                                atol=3e-2, rtol=3e-2), "logits mismatch"

    print("KERNEL_OK")
</pallas_src>

<mosaic_0001>
module attributes {stable_mosaic.version = 11 : i64} {
  func.func @_qkv_heads_kernel(%arg0: i32, %arg1: i32, %arg2: memref<1x8x32xbf16, #tpu.memory_space<vmem>>, %arg3: memref<32x32xbf16, #tpu.memory_space<vmem>>, %arg4: memref<32x32xbf16, #tpu.memory_space<vmem>>, %arg5: memref<32x32xbf16, #tpu.memory_space<vmem>>, %arg6: memref<1x2x8x16xbf16, #tpu.memory_space<vmem>>, %arg7: memref<1x2x8x16xbf16, #tpu.memory_space<vmem>>, %arg8: memref<1x2x8x16xbf16, #tpu.memory_space<vmem>>) attributes {dimension_semantics = [#tpu.dimension_semantics<parallel>, #tpu.dimension_semantics<parallel>], iteration_bounds = array<i64: 2, 1>, scalar_prefetch = 0 : i64, scratch_operands = 0 : i64, tpu.core_type = #tpu.core_type<tc>, window_params = [{transform_indices = @transform_0, window_bounds = array<i64: 1, 8, 32>}, {pipeline_mode = #tpu.pipeline_mode<synchronous>, transform_indices = @transform_1, window_bounds = array<i64: 32, 32>}, {pipeline_mode = #tpu.pipeline_mode<synchronous>, transform_indices = @transform_2, window_bounds = array<i64: 32, 32>}, {pipeline_mode = #tpu.pipeline_mode<synchronous>, transform_indices = @transform_3, window_bounds = array<i64: 32, 32>}, {transform_indices = @transform_4, window_bounds = array<i64: 1, 2, 8, 16>}, {transform_indices = @transform_5, window_bounds = array<i64: 1, 2, 8, 16>}, {transform_indices = @transform_6, window_bounds = array<i64: 1, 2, 8, 16>}]} {
    %c0 = arith.constant 0 : index
    %c0_0 = arith.constant 0 : index
    %c0_1 = arith.constant 0 : index
    %0 = vector.load %arg2[%c0, %c0_0, %c0_1] : memref<1x8x32xbf16, #tpu.memory_space<vmem>>, vector<1x8x32xbf16>
    %1 = vector.shape_cast %0 : vector<1x8x32xbf16> to vector<8x32xbf16>
    %c0_2 = arith.constant 0 : index
    %c0_3 = arith.constant 0 : index
    %2 = vector.load %arg3[%c0_2, %c0_3] : memref<32x32xbf16, #tpu.memory_space<vmem>>, vector<32x32xbf16>
    %cst = arith.constant dense<0.000000e+00> : vector<8x32xf32>
    %3 = tpu.matmul %1, %2, %cst {dimension_numbers = #tpu.dot_dimension_numbers<[1], [0], [0], [1], [0, 0, 1, 1], [], []>} : vector<8x32xbf16>, vector<32x32xbf16>, vector<8x32xf32> -> vector<8x32xf32>
    %4 = vector.extract_strided_slice %3 {offsets = [0, 0], sizes = [8, 16], strides = [1, 1]} : vector<8x32xf32> to vector<8x16xf32>
    %5 = arith.truncf %4 : vector<8x16xf32> to vector<8x16xbf16>
    %c0_4 = arith.constant 0 : index
    %c0_5 = arith.constant 0 : index
    %c0_6 = arith.constant 0 : index
    %c0_7 = arith.constant 0 : index
    %6 = vector.load %arg6[%c0_4, %c0_5, %c0_6, %c0_7] : memref<1x2x8x16xbf16, #tpu.memory_space<vmem>>, vector<1x1x8x16xbf16>
    %7 = vector.shape_cast %6 : vector<1x1x8x16xbf16> to vector<8x16xbf16>
    %8 = vector.shape_cast %5 : vector<8x16xbf16> to vector<1x1x8x16xbf16>
    tpu.vector_store %arg6[%c0_4, %c0_5, %c0_6, %c0_7], %8 {strides = array<i32>} : memref<1x2x8x16xbf16, #tpu.memory_space<vmem>>, vector<1x1x8x16xbf16>,
    %9 = vector.extract_strided_slice %3 {offsets = [0, 16], sizes = [8, 16], strides = [1, 1]} : vector<8x32xf32> to vector<8x16xf32>
    %10 = arith.truncf %9 : vector<8x16xf32> to vector<8x16xbf16>
    %c0_8 = arith.constant 0 : index
    %c1 = arith.constant 1 : index
    %c0_9 = arith.constant 0 : index
    %c0_10 = arith.constant 0 : index
    %11 = vector.load %arg6[%c0_8, %c1, %c0_9, %c0_10] : memref<1x2x8x16xbf16, #tpu.memory_space<vmem>>, vector<1x1x8x16xbf16>
    %12 = vector.shape_cast %11 : vector<1x1x8x16xbf16> to vector<8x16xbf16>
    %13 = vector.shape_cast %10 : vector<8x16xbf16> to vector<1x1x8x16xbf16>
    tpu.vector_store %arg6[%c0_8, %c1, %c0_9, %c0_10], %13 {strides = array<i32>} : memref<1x2x8x16xbf16, #tpu.memory_space<vmem>>, vector<1x1x8x16xbf16>,
    %c0_11 = arith.constant 0 : index
    %c0_12 = arith.constant 0 : index
    %14 = vector.load %arg4[%c0_11, %c0_12] : memref<32x32xbf16, #tpu.memory_space<vmem>>, vector<32x32xbf16>
    %cst_13 = arith.constant dense<0.000000e+00> : vector<8x32xf32>
    %15 = tpu.matmul %1, %14, %cst_13 {dimension_numbers = #tpu.dot_dimension_numbers<[1], [0], [0], [1], [0, 0, 1, 1], [], []>} : vector<8x32xbf16>, vector<32x32xbf16>, vector<8x32xf32> -> vector<8x32xf32>
    %16 = vector.extract_strided_slice %15 {offsets = [0, 0], sizes = [8, 16], strides = [1, 1]} : vector<8x32xf32> to vector<8x16xf32>
    %17 = arith.truncf %16 : vector<8x16xf32> to vector<8x16xbf16>
    %c0_14 = arith.constant 0 : index
    %c0_15 = arith.constant 0 : index
    %c0_16 = arith.constant 0 : index
    %c0_17 = arith.constant 0 : index
    %18 = vector.load %arg7[%c0_14, %c0_15, %c0_16, %c0_17] : memref<1x2x8x16xbf16, #tpu.memory_space<vmem>>, vector<1x1x8x16xbf16>
    %19 = vector.shape_cast %18 : vector<1x1x8x16xbf16> to vector<8x16xbf16>
    %20 = vector.shape_cast %17 : vector<8x16xbf16> to vector<1x1x8x16xbf16>
    tpu.vector_store %arg7[%c0_14, %c0_15, %c0_16, %c0_17], %20 {strides = array<i32>} : memref<1x2x8x16xbf16, #tpu.memory_space<vmem>>, vector<1x1x8x16xbf16>,
    %21 = vector.extract_strided_slice %15 {offsets = [0, 16], sizes = [8, 16], strides = [1, 1]} : vector<8x32xf32> to vector<8x16xf32>
    %22 = arith.truncf %21 : vector<8x16xf32> to vector<8x16xbf16>
    %c0_18 = arith.constant 0 : index
    %c1_19 = arith.constant 1 : index
    %c0_20 = arith.constant 0 : index
    %c0_21 = arith.constant 0 : index
    %23 = vector.load %arg7[%c0_18, %c1_19, %c0_20, %c0_21] : memref<1x2x8x16xbf16, #tpu.memory_space<vmem>>, vector<1x1x8x16xbf16>
    %24 = vector.shape_cast %23 : vector<1x1x8x16xbf16> to vector<8x16xbf16>
    %25 = vector.shape_cast %22 : vector<8x16xbf16> to vector<1x1x8x16xbf16>
    tpu.vector_store %arg7[%c0_18, %c1_19, %c0_20, %c0_21], %25 {strides = array<i32>} : memref<1x2x8x16xbf16, #tpu.memory_space<vmem>>, vector<1x1x8x16xbf16>,
    %c0_22 = arith.constant 0 : index
    %c0_23 = arith.constant 0 : index
    %26 = vector.load %arg5[%c0_22, %c0_23] : memref<32x32xbf16, #tpu.memory_space<vmem>>, vector<32x32xbf16>
    %cst_24 = arith.constant dense<0.000000e+00> : vector<8x32xf32>
    %27 = tpu.matmul %1, %26, %cst_24 {dimension_numbers = #tpu.dot_dimension_numbers<[1], [0], [0], [1], [0, 0, 1, 1], [], []>} : vector<8x32xbf16>, vector<32x32xbf16>, vector<8x32xf32> -> vector<8x32xf32>
    %28 = vector.extract_strided_slice %27 {offsets = [0, 0], sizes = [8, 16], strides = [1, 1]} : vector<8x32xf32> to vector<8x16xf32>
    %29 = arith.truncf %28 : vector<8x16xf32> to vector<8x16xbf16>
    %c0_25 = arith.constant 0 : index
    %c0_26 = arith.constant 0 : index
    %c0_27 = arith.constant 0 : index
    %c0_28 = arith.constant 0 : index
    %30 = vector.load %arg8[%c0_25, %c0_26, %c0_27, %c0_28] : memref<1x2x8x16xbf16, #tpu.memory_space<vmem>>, vector<1x1x8x16xbf16>
    %31 = vector.shape_cast %30 : vector<1x1x8x16xbf16> to vector<8x16xbf16>
    %32 = vector.shape_cast %29 : vector<8x16xbf16> to vector<1x1x8x16xbf16>
    tpu.vector_store %arg8[%c0_25, %c0_26, %c0_27, %c0_28], %32 {strides = array<i32>} : memref<1x2x8x16xbf16, #tpu.memory_space<vmem>>, vector<1x1x8x16xbf16>,
    %33 = vector.extract_strided_slice %27 {offsets = [0, 16], sizes = [8, 16], strides = [1, 1]} : vector<8x32xf32> to vector<8x16xf32>
    %34 = arith.truncf %33 : vector<8x16xf32> to vector<8x16xbf16>
    %c0_29 = arith.constant 0 : index
    %c1_30 = arith.constant 1 : index
    %c0_31 = arith.constant 0 : index
    %c0_32 = arith.constant 0 : index
    %35 = vector.load %arg8[%c0_29, %c1_30, %c0_31, %c0_32] : memref<1x2x8x16xbf16, #tpu.memory_space<vmem>>, vector<1x1x8x16xbf16>
    %36 = vector.shape_cast %35 : vector<1x1x8x16xbf16> to vector<8x16xbf16>
    %37 = vector.shape_cast %34 : vector<8x16xbf16> to vector<1x1x8x16xbf16>
    tpu.vector_store %arg8[%c0_29, %c1_30, %c0_31, %c0_32], %37 {strides = array<i32>} : memref<1x2x8x16xbf16, #tpu.memory_space<vmem>>, vector<1x1x8x16xbf16>,
    return
  }
  func.func @transform_0(%arg0: i32, %arg1: i32) -> (i32, i32, i32) {
    %c0_i32 = arith.constant 0 : i32
    %c0_i32_0 = arith.constant 0 : i32
    return %arg0, %arg1, %c0_i32 : i32, i32, i32
  }
  func.func @transform_1(%arg0: i32, %arg1: i32) -> (i32, i32) {
    %c0_i32 = arith.constant 0 : i32
    %c0_i32_0 = arith.constant 0 : i32
    %c0_i32_1 = arith.constant 0 : i32
    return %c0_i32, %c0_i32_0 : i32, i32
  }
  func.func @transform_2(%arg0: i32, %arg1: i32) -> (i32, i32) {
    %c0_i32 = arith.constant 0 : i32
    %c0_i32_0 = arith.constant 0 : i32
    %c0_i32_1 = arith.constant 0 : i32
    return %c0_i32, %c0_i32_0 : i32, i32
  }
  func.func @transform_3(%arg0: i32, %arg1: i32) -> (i32, i32) {
    %c0_i32 = arith.constant 0 : i32
    %c0_i32_0 = arith.constant 0 : i32
    %c0_i32_1 = arith.constant 0 : i32
    return %c0_i32, %c0_i32_0 : i32, i32
  }
  func.func @transform_4(%arg0: i32, %arg1: i32) -> (i32, i32, i32, i32) {
    %c0_i32 = arith.constant 0 : i32
    %c0_i32_0 = arith.constant 0 : i32
    %c0_i32_1 = arith.constant 0 : i32
    return %arg0, %c0_i32, %arg1, %c0_i32_0 : i32, i32, i32, i32
  }
  func.func @transform_5(%arg0: i32, %arg1: i32) -> (i32, i32, i32, i32) {
    %c0_i32 = arith.constant 0 : i32
    %c0_i32_0 = arith.constant 0 : i32
    %c0_i32_1 = arith.constant 0 : i32
    return %arg0, %c0_i32, %arg1, %c0_i32_0 : i32, i32, i32, i32
  }
  func.func @transform_6(%arg0: i32, %arg1: i32) -> (i32, i32, i32, i32) {
    %c0_i32 = arith.constant 0 : i32
    %c0_i32_0 = arith.constant 0 : i32
    %c0_i32_1 = arith.constant 0 : i32
    return %arg0, %c0_i32, %arg1, %c0_i32_0 : i32, i32, i32, i32
  }
}

</mosaic_0001>

<bundles_post_ra>
// kernel: tpu_custom_call.1
= control target key start
LH: loop header
LB: loop body
LE: loop exit
PB: predicated region body
PF: predicated region fallthrough
CT: control target
= control target key end

     0   :  { %s1584_s0 = inlined_call_operand.hbm [shape: bf16[2,8,32], index: 0, kind: input, shape index: {}]   ;;  %s1585_s1 = inlined_call_operand.hbm [shape: bf16[32,32], index: 1, kind: input, shape index: {}]   ;;  %s1586_s2 = inlined_call_operand.hbm [shape: bf16[32,32], index: 2, kind: input, shape index: {}]   ;;  %s1587_s3 = inlined_call_operand.hbm [shape: bf16[32,32], index: 3, kind: input, shape index: {}]   ;;  %s1588_s4 = inlined_call_operand.hbm [shape: bf16[2,2,8,16], index: 4, kind: output, shape index: {0}]   ;;  %s1589_s5 = inlined_call_operand.hbm [shape: bf16[2,2,8,16], index: 5, kind: output, shape index: {1}]   ;;  %s1590_s6 = inlined_call_operand.hbm [shape: bf16[2,2,8,16], index: 6, kind: output, shape index: {2}]  }
   0x1   :  { %1594 = sst [smem:[#allocation19_spill]] %s1584_s0 }
   0x2   :  { %1595 = sst [smem:[#allocation20_spill]] %s1585_s1 }
   0x3   :  { %1596 = sst [smem:[#allocation21_spill]] %s1586_s2 }
   0x4   :  { %1597 = sst [smem:[#allocation22_spill]] %s1587_s3 }
   0x5   :  { %12 = vsyncpa [#allocation3], 0 }
   0x6   :  { %14 = vsyncpa [#allocation3 + $0x1], 0 }
   0x7   :  { %15 = vsyncpa [#allocation6], 0 }
   0x8   :  { %16 = vsyncpa [#allocation9], 0 }
   0x9   :  { %17 = vsyncpa [#allocation4], 0 }
   0xa   :  { %19 = vsyncpa [#allocation4 + $0x1], 0 }
   0xb   :  { %20 = vsyncpa [#allocation12], 0 }
   0xc   :  { %22 = vsyncpa [#allocation12 + $0x1], 0  ;;  %s1291_s21 = smov 0   ;;  %s1293_s22 = smov 0  }
   0xd   :  { %s1295_s23 = smov 0   ;;  %s1297_s24 = smov 0  }
   0xe   :  { %s1299_s25 = smov 0   ;;  %s1301_s26 = smov 0  }
   0xf LB: > { %s1322_s27 = sadd.s32 4294967295, %s1240_s26   ;;  %s1593_s28 = sadd.s32 4294967294, %s1240_s26   ;;  %s1240_s26 = sphi %s1301_s26, %s28_s26   ;;  %s1236_s25 = sphi %s1299_s25, %s1622_s25   ;;  %s1232_s24 = sphi %s1297_s24, %s1621_s24   ;;  %s1228_s23 = sphi %s1295_s23, %s1620_s23   ;;  %s1224_s22 = sphi %s1293_s22, %s1619_s22   ;;  %s1220_s21 = sphi %s1291_s21, %s1618_s21  }
  0x10   : > { %p62_p0 = scmp.ne.s32.totalorder %s1224_s22, %s1220_s21  ;;  %p1591_p1 = scmp.eq.s32.totalorder %s1322_s27, 0 }
  0x11   : > { %p157_p3 = scmp.eq.s32.totalorder %s1593_s28, 1  ;;  %p794_p5 = scmp.ge.s32.totalorder %s1240_s26, 1 }
  0x12   : > { %p1333_p4 = por %p1591_p1, %p62_p0  ;;  %p220_p7 = scmp.lt.s32.totalorder %s1240_s26, 3 }
  0x13   : > { %p1338_p6 = por %p157_p3, %p62_p0  ;;  %s1242_s8 = smov [#allocation5]  }
  0x14   : > { %s1598_s29 = scalar_select %p1333_p4, 1, 0 }
  0x15   : > { %s1599_s30 = scalar_select %p1338_p6, 1, 0 }
  0x16   : > { %p1343_p8 = pnand %p794_p5, %p220_p7  ;;  %s232_s9 = sshll.u32 %s1242_s8, 4  ;;  %s233_s9 = int_to_ptr.vmem [resolvable:$true] %s232_s9 }
  0x17   : > { %s1243_s11 = smov [#allocation7]   ;;  %s1244_s13 = smov [#allocation8]  }
  0x18   : > { %p894_p9 = pneg %p1343_p8  ;;  %s245_s12 = sshll.u32 %s1243_s11, 4  ;;  %s246_s12 = int_to_ptr.vmem [resolvable:$true] %s245_s12 }
  0x19   : > { %s258_s14 = sshll.u32 %s1244_s13, 4  ;;  %s1001_s15 = scalar_lea.vmem %s233_s9, 256  ;;  %s259_s14 = int_to_ptr.vmem [resolvable:$true] %s258_s14 }
  0x1a   : > { %p1352_p11 = pnand %p894_p9, %p1591_p1  ;;  %p1002_p13 = scmp.ne.s32.totalorder %s233_s9, %s1001_s15 }
  0x1b   : > { %p1009_p5 = scmp.lt.s32.totalorder %s233_s9, %s233_s9  ;;  %p1010_p7 = scmp.lt.s32.totalorder %s1001_s15, %s1001_s15 }
  0x1c   : > { %p992_p12 = pneg %p1352_p11 }
  0x1d   : > { %p1011_p9 = por %p1010_p7, %p1009_p5 }
  0x1e   : > { %p1004_p0 = pnand %p1002_p13, %p992_p12 }
  0x20   : > { %p1005_p3 = pneg %p1004_p0 }
  0x22   : > { %p1012_p10 = pnand %p1011_p9, %p1005_p3 }
  0x24   : > { %1015 = shalt.err (!%p1012_p10)
}
  0x25   : > { %s1245_s16 = smov 64   ;;  %s1246_s17 = smov 4  }
  0x26   : > { %s1602_s1 = sld [smem:[#allocation20_spill]]  ;;  %s1027_s20 = scalar_lea.vmem %s246_s12, 256 }
  0x27   : > { %p1028_p1 = scmp.ne.s32.totalorder %s246_s12, %s1027_s20  ;;  %p1035_p2 = scmp.lt.s32.totalorder %s246_s12, %s246_s12 }
  0x28   : > { %p1036_p6 = scmp.lt.s32.totalorder %s1027_s20, %s1027_s20 }
  0x29   : > { %p1030_p13 = pnand %p1028_p1, %p992_p12 }
  0x2a   : > { %p1037_p5 = por %p1036_p6, %p1035_p2 }
  0x2b   : > { %p1031_p0 = pneg %p1030_p13 }
  0x2c   : > { %897 = dma.hbm_to_vmem [thread:$0]  (!%p1352_p11), %s1602_s1, 256, %s233_s9, [#allocation6], %s1245_s16, %s1245_s16, %s1246_s17  }
  0x2d   : > { %p1038_p3 = pnand %p1037_p5, %p1031_p0 }
  0x2f   : > { %1041 = shalt.err (!%p1038_p3)
}
  0x30   : > { %s1603_s2 = sld [smem:[#allocation21_spill]]  ;;  %s1053_s9 = scalar_lea.vmem %s259_s14, 256 }
  0x31   : > { %p1054_p10 = scmp.ne.s32.totalorder %s259_s14, %s1053_s9  ;;  %p1061_p9 = scmp.lt.s32.totalorder %s259_s14, %s259_s14 }
  0x32   : > { %p1062_p13 = scmp.lt.s32.totalorder %s1053_s9, %s1053_s9 }
  0x33   : > { %p1056_p7 = pnand %p1054_p10, %p992_p12 }
  0x34   : > { %p1063_p4 = por %p1062_p13, %p1061_p9 }
  0x35   : > { %p1057_p1 = pneg %p1056_p7 }
  0x36   : > { %900 = dma.hbm_to_vmem [thread:$0]  (!%p1352_p11), %s1603_s2, 256, %s246_s12, [#allocation6], %s1245_s16, %s1245_s16, %s1246_s17  }
  0x37   : > { %p1064_p2 = pnand %p1063_p4, %p1057_p1 }
  0x39   : > { %1067 = shalt.err (!%p1064_p2)
}
  0x3a   : > { %s1604_s3 = sld [smem:[#allocation22_spill]]  ;;  %s49_s12 = sadd.s32 1, %s1228_s23 }
  0x3b   : > { %s40_s18 = sadd.s32 1, %s1236_s25  ;;  %p56_p4 = scmp.ne.s32.totalorder %s1228_s23, %s1224_s22 }
  0x3c   : > { %p42_p6 = scmp.ge.s32.totalorder %s40_s18, 2  ;;  %p57_p12 = scmp.eq.s32.totalorder %s1240_s26, 0 }
  0x3d   : > { %p1605_p0 = scmp.eq.s32.totalorder %s1322_s27, 1  ;;  %p921_p3 = scmp.lt.s32.totalorder %s1240_s26, 2 }
  0x3e   : > { %s1624_s18 = smov (%p42_p6, %s40_s18), 0  ;;  %p58_p10 = por %p57_p12, %p56_p4 }
  0x3f   : > { %p1389_p5 = por %p1605_p0, %p56_p4  ;;  %s272_s19 = sand.u32 1, %s1228_s23  }
  0x40   : > { %903 = dma.hbm_to_vmem [thread:$0]  (!%p1352_p11), %s1604_s3, 256, %s259_s14, [#allocation9], %s1245_s16, %s1245_s16, %s1246_s17  }
  0x41   : > { %s44_s20 = ssub.s32 %s1236_s25, %s1624_s18  ;;  %s799_s14 = sshll.u32 %s272_s19, 2 }
  0x42   : > { %p47_p7 = scmp.eq.s32.totalorder %s44_s20, 0  ;;  %s800_s16 = sshll.u32 %s1236_s25, 6 }
  0x43   : > { %s1607_s0 = sld [smem:[#allocation19_spill]]  ;;  %s276_s13 = scalar_lea.vmem [#allocation2], %s799_s14 }
  0x44   : > { %s1401_s17 = scalar_select %p47_p7, %s1228_s23, %s49_s12  }
  0x45   : > { %s284_s15 = sshll.u32 %s276_s13, 4  ;;  %p1408_p11 = pnand %p921_p3, %p58_p10  ;;  %s285_s15 = int_to_ptr.vmem [resolvable:$true] %s284_s15 }
  0x46   : > { %s273_s1 = scalar_lea.sflag [#allocation3], %s272_s19  ;;  %s1081_s20 = scalar_lea.vmem %s285_s15, 64 }
  0x47   : > { %p1070_p1 = pneg %p1408_p11  ;;  %p1082_p9 = scmp.ne.s32.totalorder %s285_s15, %s1081_s20 }
  0x48   : > { %s1247_s12 = smov [#allocation2]  }
  0x49   : > { %s282_s9 = scalar_lea.hbm %s1607_s0, %s800_s16  ;;  %p1084_p13 = pnand %p1082_p9, %p1070_p1 }
  0x4a   : > { %s1086_s2 = sshll.u32 %s1247_s12, 4  ;;  %s1087_s2 = int_to_ptr.vmem [resolvable:$false] %s1086_s2 }
  0x4b   : > { %p1085_p2 = pneg %p1084_p13  ;;  %s1088_s16 = scalar_lea.vmem %s1087_s2, 128 }
  0x4c   : > { %p1089_p4 = scmp.lt.s32.totalorder %s285_s15, %s1087_s2  ;;  %p1090_p6 = scmp.lt.s32.totalorder %s1088_s16, %s1081_s20 }
  0x4e   : > { %p1091_p12 = por %p1090_p6, %p1089_p4 }
  0x50   : > { %p1092_p0 = pnand %p1091_p12, %p1085_p2 }
  0x52   : > { %1095 = shalt.err (!%p1092_p0)
}
  0x53   : > { %907 = dma.hbm_to_vmem [thread:$0]  (!%p1408_p11), %s282_s9, 64, %s285_s15, %s273_s1  }
  0x54   : > { %293 = sbr.rel (%p1343_p8) target bundleno = 475 (0x1db), region = 36  ;;  %s1419_s19 = sand.u32 (!%p1343_p8), 1, %s1224_s22  }
  0x55   : > { %s802_s14 = sshll.u32 (!%p1343_p8), %s1419_s19, 2  ;;  %s296_s8 = scalar_lea.sflag (!%p1343_p8), [#allocation3], %s1419_s19 }
  0x56   : > { %s299_s11 = scalar_lea.vmem (!%p1343_p8), [#allocation2], %s802_s14  ;;  %p1609_p3 = scmp.ne.s32.totalorder (!%p1343_p8), %s1598_s29, 0 }
  0x59   : > { %1199 = dma.done.wait (%p1609_p3), %s296_s8, 64  }
  0x5a   : > { %1201 = vsyncadd (%p1609_p3), %s296_s8, 4294967232  ;;  %p1610_p10 = scmp.eq.s32.totalorder %s1322_s27, 0 }
  0x5c   : > { %1203 = dma.done.wait (%p1610_p10), [#allocation6], 512   ;;  %p1611_p7 = pmov %p1610_p10 }
  0x5e   : > { %1205 = vsyncadd (%p1611_p7), [#allocation6], 4294966784  ;;  %p1612_p8 = pmov %p1611_p7 }
  0x5f   : > { %p1613_p11 = pmov %p1611_p7 }
  0x60   : > { %1207 = dma.done.wait (%p1612_p8), [#allocation9], 256  }
  0x61   : > { %1209 = vsyncadd (%p1613_p11), [#allocation9], 4294967040  ;;  %v1248_v0 = vmov 0.0   ;;  %vm1249_vm0 = vmmov 0   ;;  %v984_v1 = vld [vmem:[#allocation5 + $0x8] sm:$0xff]   ;;  %v985_v2 = vld [vmem:[#allocation7 + $0x8] sm:$0xff]  }
  0x62   : > { %850 = vmatprep.subr.bf16.mxu0 %v1248_v0  ;;  %858 = vmatprep.subr.bf16.mxu1 %v1248_v0  ;;  %v986_v3 = vld [vmem:[#allocation5] sm:$0xff]   ;;  %v987_v4 = vld [vmem:[#allocation7] sm:$0xff]   ;;  %v351_v5 = vld [vmem:[%s299_s11] sm:$0xf]  ;;  %vm368_vm1 = vcmask 261120   ;;  %s806_s1 = sshll.u32 %s1419_s19, 3 }
  0x63   : > { %854 = vmatprep.mubr.msk.bf16.mxu0 %vm1249_vm0, %v1248_v0  ;;  %862 = vmatprep.mubr.msk.bf16.mxu1 %vm1249_vm0, %v1248_v0  ;;  %v988_v6 = vld [vmem:[#allocation8 + $0x8] sm:$0xff]   ;;  %v989_v7 = vld [vmem:[#allocation8] sm:$0xff]   ;;  %vm413_vm2 = vcmask 125952   ;;  %s1439_s2 = scalar_lea.vmem [#allocation10], %s806_s1  ;;  %s1250_s28 = smov 112  }
  0x64   : > { %851 = vmatpush3.bf16.msra.mxu0 %v984_v1  ;;  %859 = vmatpush3.bf16.msra.mxu1 %v985_v2  ;;  %s342_s29 = scalar_lea.vmem [#allocation11], %s806_s1  ;;  %s1444_s7 = scalar_lea.vmem [#allocation13], %s806_s1 }
  0x65   : > { %852 = vmatprep.subr.bf16.mxu0 %v1248_v0  ;;  %860 = vmatprep.subr.bf16.mxu1 %v1248_v0  ;;  %s597_s9 = sshll.u32 %s342_s29, 4  ;;  %s560_s13 = sand.u32 1, %s1322_s27   ;;  %s1452_s9 = int_to_ptr.vmem [resolvable:$true] %s597_s9 }
  0x66   : > { %s1450_s15 = sshll.u32 %s1232_s24, 7  ;;  %s580_s20 = sshll.u32 %s1439_s2, 4  ;;  %s1462_s20 = int_to_ptr.vmem [resolvable:$true] %s580_s20 }
  0x67   : > { %s1459_s14 = scalar_lea.hbm %s1589_s5, %s1450_s15  ;;  %s1465_s24 = scalar_lea.sflag [#allocation12], %s560_s13 }
  0x68   : > { %853 = vmatpush3.bf16.msra.mxu0 %v986_v3  ;;  %861 = vmatpush3.bf16.msra.mxu1 %v987_v4  ;;  %s1096_s8 = scalar_lea.vmem %s1452_s9, 128  ;;  %s1251_s11 = smov [#allocation11]  }
  0x69   : > { %866 = vmatprep.subr.bf16.mxu0 %v1248_v0  ;;  %p1097_p1 = scmp.ne.s32.totalorder %s1452_s9, %s1096_s8  ;;  %s1100_s1 = sshll.u32 %s1251_s11, 4  ;;  %s1101_s1 = int_to_ptr.vmem [resolvable:$false] %s1100_s1 }
  0x6a   : > { %p1103_p2 = scmp.lt.s32.totalorder %s1452_s9, %s1101_s1 }
  0x6b   : > { %855 = vmatmul.mubr.msk.bf16.vlgmr.msra.gmra.mxu0 %vm368_vm1, %v351_v5  ;;  %863 = vmatmul.mubr.msk.bf16.vlgmr.msra.gmra.mxu1 %vm368_vm1, %v351_v5  ;;  %p1098_p9 = pnand %p1097_p1, %p1389_p5 }
  0x6c   : > { %867 = vmatpush3.bf16.msra.mxu0 %v988_v6  ;;  %870 = vmatprep.mubr.msk.bf16.mxu0 %vm1249_vm0, %v1248_v0 }
  0x6d   : > { %868 = vmatprep.subr.bf16.mxu0 %v1248_v0  ;;  %p1099_p13 = pneg %p1098_p9 }
  0x70   : > { %869 = vmatpush3.bf16.msra.mxu0 %v989_v7 }
  0x73   : > { %871 = vmatmul.mubr.msk.bf16.vlgmr.msra.gmra.mxu0 %vm368_vm1, %v351_v5 }
 0x12b   : > { %v406_v8 = vpop.f32.mrf.mxu0  ;;  %v473_v10 = vpop.f32.mrf.mxu1 }
 0x12c   : > { %v412_v9 = vpack.c.bf16 %v406_v8, %v406_v8  ;;  %v479_v11 = vpack.c.bf16 %v473_v10, %v473_v10 }
 0x12d   : > { %v856_v12 = vpop.f32.mrf.mxu0  ;;  %v864_v13 = vpop.f32.mrf.mxu1 }
 0x12e   : > { %414 = vst.msk [vmem:[%s1439_s2] sm:$0xf] %vm413_vm2, %v412_v9  ;;  %484 = vrot.lane.b32.xlu0 %v479_v11, %s1250_s28  ;;  %480 = vst.msk [vmem:[%s342_s29] sm:$0xf] %vm413_vm2, %v479_v11 }
 0x12f   : > { %v409_v14 = vpop.f32.mrf.mxu0  ;;  %v476_v15 = vpop.f32.mrf.mxu1 }
 0x131   : > { %v857_v16 = vpop.f32.mrf.mxu0  ;;  %v865_v17 = vpop.f32.mrf.mxu1 }
 0x132   : > { %418 = vrot.lane.b32.xlu0 %v412_v9, %s1250_s28 }
 0x133   : > { %v539_v18 = vpop.f32.mrf.mxu0 }
 0x134   : > { %v545_v19 = vpack.c.bf16 %v539_v18, %v539_v18 }
 0x135   : > { %v872_v20 = vpop.f32.mrf.mxu0 }
 0x136   : > { %550 = vrot.lane.b32.xlu1 %v545_v19, %s1250_s28  ;;  %546 = vst.msk [vmem:[%s1444_s7] sm:$0xf] %vm413_vm2, %v545_v19  ;;  %s1102_s28 = scalar_lea.vmem %s1101_s1, 256 }
 0x137   : > { %v542_v21 = vpop.f32.mrf.mxu0  ;;  %p1104_p4 = scmp.lt.s32.totalorder %s1102_s28, %s1096_s8 }
 0x139   : > { %v873_v22 = vpop.f32.mrf.mxu0  ;;  %p1105_p6 = por %p1104_p4, %p1103_p2 }
 0x13b   : > { %p1106_p12 = pnand %p1105_p6, %p1099_p13 }
 0x1a0   : > { %v485_v23 = vpop.permute.xlu0 %484 }
 0x1a1   : > { %818 = vst.msk [vmem:[%s342_s29 + $0x4] sm:$0xf] %vm413_vm2, %v485_v23 }
 0x1a2   : > { %1109 = shalt.err (!%p1106_p12)
}
 0x1a3   : > { %s1110_s29 = scalar_lea.hbm %s1459_s14, 128  ;;  %s1114_s16 = scalar_lea.hbm %s1589_s5, 256 }
 0x1a4   : > { %p1111_p0 = scmp.ne.s32.totalorder %s1459_s14, %s1110_s29  ;;  %p1115_p7 = scmp.lt.s32.totalorder %s1459_s14, %s1589_s5 }
 0x1a5   : > { %p1116_p8 = scmp.lt.s32.totalorder %s1114_s16, %s1110_s29 }
 0x1a6   : > { %p1112_p3 = pnand %p1111_p0, %p1389_p5 }
 0x1a7   : > { %p1117_p11 = por %p1116_p8, %p1115_p7 }
 0x1a8   : > { %p1113_p10 = pneg %p1112_p3 }
 0x1aa   : > { %p1118_p1 = pnand %p1117_p11, %p1113_p10 }
 0x1ac   : > { %1121 = shalt.err (!%p1118_p1)
}
 0x1ad   : > { %s1252_s8 = smov 64   ;;  %s1253_s1 = smov 4   ;;  %v419_v24 = vpop.permute.xlu0 %418 }
 0x1ae   : > { %889 = dma.vmem_to_hbm [thread:$0]  (%p1389_p5), %s1452_s9, 128, %s1459_s14, %s1465_s24, %s1252_s8, %s1252_s8, %s1253_s1  }
 0x1af   : > { %s1495_s29 = scalar_lea.hbm %s1588_s4, %s1450_s15  ;;  %813 = vst.msk [vmem:[%s1439_s2 + $0x4] sm:$0xf] %vm413_vm2, %v419_v24  ;;  %s1614_s13 = sshll.u32 %s1444_s7, 4  ;;  %s1501_s13 = int_to_ptr.vmem [resolvable:$true] %s1614_s13 }
 0x1b0   : > { %s1507_s11 = scalar_lea.hbm %s1590_s6, %s1450_s15  ;;  %s556_s0 = scalar_lea.sflag [#allocation4], %s1419_s19 }
 0x1b1   : > { %s1122_s3 = scalar_lea.vmem %s1462_s20, 128  ;;  %s1254_s9 = smov [#allocation10]  }
 0x1b2   : > { %p1123_p9 = scmp.ne.s32.totalorder %s1462_s20, %s1122_s3  ;;  %s1126_s14 = sshll.u32 %s1254_s9, 4  ;;  %s1127_s14 = int_to_ptr.vmem [resolvable:$false] %s1126_s14 }
 0x1b3   : > { %s1128_s27 = scalar_lea.vmem %s1127_s14, 256  ;;  %p1129_p4 = scmp.lt.s32.totalorder %s1462_s20, %s1127_s14 }
 0x1b4   : > { %p1124_p13 = pnand %p1123_p9, %p1389_p5  ;;  %p1130_p6 = scmp.lt.s32.totalorder %s1128_s27, %s1122_s3 }
 0x1b6   : > { %p1125_p2 = pneg %p1124_p13  ;;  %p1131_p12 = por %p1130_p6, %p1129_p4 }
 0x1b8   : > { %p1132_p0 = pnand %p1131_p12, %p1125_p2 }
 0x1ba   : > { %1135 = shalt.err (!%p1132_p0)
}
 0x1bb   : > { %s1136_s2 = scalar_lea.hbm %s1495_s29, 128  ;;  %s1140_s28 = scalar_lea.hbm %s1588_s4, 256 }
 0x1bc   : > { %p1137_p3 = scmp.ne.s32.totalorder %s1495_s29, %s1136_s2  ;;  %p1141_p8 = scmp.lt.s32.totalorder %s1495_s29, %s1588_s4 }
 0x1bd   : > { %p1142_p11 = scmp.lt.s32.totalorder %s1140_s28, %s1136_s2 }
 0x1be   : > { %p1138_p10 = pnand %p1137_p3, %p1389_p5 }
 0x1bf   : > { %p1143_p1 = por %p1142_p11, %p1141_p8 }
 0x1c0   : > { %p1139_p7 = pneg %p1138_p10 }
 0x1c2   : > { %p1144_p9 = pnand %p1143_p1, %p1139_p7 }
 0x1c4   : > { %1147 = shalt.err (!%p1144_p9)
}
 0x1c5   : > { %888 = dma.vmem_to_hbm [thread:$0]  (%p1389_p5), %s1462_s20, 128, %s1495_s29, %s556_s0, %s1252_s8, %s1252_s8, %s1253_s1   ;;  %v551_v25 = vpop.permute.xlu1 %550 }
 0x1c6   : > { %823 = vst.msk [vmem:[%s1444_s7 + $0x4] sm:$0xf] %vm413_vm2, %v551_v25  ;;  %s1148_s3 = scalar_lea.vmem %s1501_s13, 128  ;;  %s1255_s9 = smov [#allocation13]  }
 0x1c7   : > { %p1149_p13 = scmp.ne.s32.totalorder %s1501_s13, %s1148_s3  ;;  %s1152_s14 = sshll.u32 %s1255_s9, 4  ;;  %s1153_s14 = int_to_ptr.vmem [resolvable:$false] %s1152_s14 }
 0x1c8   : > { %s1154_s27 = scalar_lea.vmem %s1153_s14, 256  ;;  %p1155_p6 = scmp.lt.s32.totalorder %s1501_s13, %s1153_s14 }
 0x1c9   : > { %p1150_p2 = pnand %p1149_p13, %p1389_p5  ;;  %p1156_p12 = scmp.lt.s32.totalorder %s1154_s27, %s1148_s3 }
 0x1cb   : > { %p1151_p4 = pneg %p1150_p2  ;;  %p1157_p0 = por %p1156_p12, %p1155_p6 }
 0x1cd   : > { %p1158_p3 = pnand %p1157_p0, %p1151_p4 }
 0x1cf   : > { %1161 = shalt.err (!%p1158_p3)
}
 0x1d0   : > { %s1162_s0 = scalar_lea.hbm %s1507_s11, 128  ;;  %s1166_s29 = scalar_lea.hbm %s1590_s6, 256 }
 0x1d1   : > { %p1163_p10 = scmp.ne.s32.totalorder %s1507_s11, %s1162_s0  ;;  %p1167_p11 = scmp.lt.s32.totalorder %s1507_s11, %s1590_s6 }
 0x1d2   : > { %p1168_p1 = scmp.lt.s32.totalorder %s1166_s29, %s1162_s0 }
 0x1d3   : > { %p1164_p7 = pnand %p1163_p10, %p1389_p5 }
 0x1d4   : > { %p1169_p9 = por %p1168_p1, %p1167_p11 }
 0x1d5   : > { %p1165_p8 = pneg %p1164_p7 }
 0x1d7   : > { %p1170_p13 = pnand %p1169_p9, %p1165_p8 }
 0x1d9   : > { %1173 = shalt.err (!%p1170_p13)
}
 0x1da   : > { %890 = dma.vmem_to_hbm [thread:$0]  (%p1389_p5), %s1501_s13, 128, %s1507_s11, %s1465_s24, %s1252_s8, %s1252_s8, %s1253_s1  }
 0x1db PF: > { %s629_s15 = sand.u32 1, %s1220_s21   ;;  %p1615_p2 = scmp.ne.s32.totalorder %s1599_s30, 0 }
 0x1dc   : > { %p1616_p4 = scmp.ge.s32.totalorder %s1240_s26, 2  ;;  %s630_s28 = scalar_lea.sflag [#allocation4], %s629_s15 }
 0x1de   : > { %p909_p6 = pnand %p1616_p4, %p1615_p2 }
 0x1e0   : > { %p910_p12 = pneg %p909_p6 }
 0x1e2   : > { %1211 = dma.done.wait (%p910_p12), %s630_s28, 128  }
 0x1e3   : > { %1213 = vsyncadd (%p910_p12), %s630_s28, 4294967168  ;;  %s1617_s10 = sadd.s32 4294967294, %s1240_s26  }
 0x1e4   : > { %s638_s12 = sand.u32 1, %s1617_s10  }
 0x1e5   : > { %s639_s16 = scalar_lea.sflag [#allocation12], %s638_s12 }
 0x1e6   : > { %1215 = dma.done.wait (%p910_p12), %s639_s16, 256  }
 0x1e7   : > { %1217 = vsyncadd (%p910_p12), %s639_s16, 4294967040  ;;  %s28_s26 = sadd.s32 1, %s1240_s26   ;;  %s1618_s21 = smov %s1224_s22 }
 0x1e8   : > { %p25_p5 = scmp.ge.s32.totalorder %s28_s26, 4   ;;  %s1619_s22 = smov %s1228_s23 }
 0x1e9   : > { %s1620_s23 = smov %s1401_s17  ;;  %s1621_s24 = smov %s1236_s25 }
 0x1ea   : > { %s1622_s25 = smov %s1624_s18  ;;  %27 = sbr.rel (!%p25_p5) target bundleno = 15 (0xf), region = 128 }
 0x1ef   :  { %653 = vsyncpa [#allocation3], 1 }
 0x1f0   :  { %655 = vsyncpa [#allocation3 + $0x1], 1 }
 0x1f1   :  { %656 = vsyncpa [#allocation6], 1 }
 0x1f2   :  { %657 = vsyncpa [#allocation9], 1 }
 0x1f3   :  { %658 = vsyncpa [#allocation4], 1 }
 0x1f4   :  { %660 = vsyncpa [#allocation4 + $0x1], 1 }
 0x1f5   :  { %661 = vsyncpa [#allocation12], 1 }
 0x1f6   :  { %663 = vsyncpa [#allocation12 + $0x1], 1 }

</bundles_post_ra>
